<compile_context>
chip_gen: v7x
topology: tpu7x:2x2x1
jax: 0.10.0
libtpu: 0.0.40
codegen_flags: <defaults>
</compile_context>

<pallas_src>
import functools

import jax
import jax.numpy as jnp
from jax.experimental import pallas as pl
from jax.experimental.pallas import tpu as pltpu


def sg_layer_kernel(x_ref, w1_ref, b1_ref, w2_ref, b2_ref, o_ref, *, groups, s):
    # x_ref block: (groups * s, d)  -- `groups` consecutive (s, d) groups, row-major.
    x = x_ref[...]

    # conv1 (1x1, BN1 scale folded into W1) + bias + ReLU   -> (groups*s, C)
    y1 = jnp.dot(x, w1_ref[...], preferred_element_type=jnp.float32)
    y1 = jnp.maximum(y1 + b1_ref[...], 0.0)

    # conv2 (1x1, BN2 scale folded into W2) + bias + ReLU   -> (groups*s, C)
    y2 = jnp.dot(y1, w2_ref[...], preferred_element_type=jnp.float32)
    y2 = jnp.maximum(y2 + b2_ref[...], 0.0)

    # adaptive_max_pool1d(., 1) == max over the s positions of every group.
    C = y2.shape[-1]
    o_ref[...] = jnp.max(y2.reshape(groups, s, C), axis=1)   # (groups, C)


def _pick_groups_per_step(bn, s, d, C, vmem_budget_bytes=12 * 1024 * 1024):
    """Largest per-step group count whose f32 working set fits the VMEM budget.

    Partial blocks must stay (8,128)-legal: g % 8 == 0 for the (g, C) output
    tile and the (g*s, d) input tile.  Prefers >= 2 grid steps (megacore) when
    the split stays legal.
    """
    def step_bytes(g):
        # double-buffered x block + two (g*s, C) intermediates
        # + double-buffered (g, C) output tile, all f32.
        return 4 * (2 * g * s * d + 2 * g * s * C + 2 * g * C)

    fits_all = step_bytes(bn) <= vmem_budget_bytes
    if fits_all and bn % 16 == 0:
        return bn // 2          # 2 parallel steps -> both v7x TensorCores busy
    if fits_all:
        return bn               # single step covering the whole (small) problem

    # Too big for one step: largest divisor of bn that is a multiple of 8
    # and fits the VMEM budget.
    for g in range(bn - 1, 0, -1):
        if bn % g == 0 and g % 8 == 0 and step_bytes(g) <= vmem_budget_bytes:
            return g
    return bn                   # fall back to a single full-problem step


def sg_layer_forward(x, w1, w2, scale1, bias1, scale2, bias2):
    """x: (b, n, s, d) -> out: (b, C, n)   (matches the PyTorch module)."""
    b, n, s, d = x.shape
    C = w1.shape[1]
    bn = b * n

    # Fold the inference-mode BN scale into the conv weights; only the bias
    # add survives into the kernel epilogue.
    w1f = (w1 * scale1[None, :]).astype(jnp.float32)          # (d, C)
    w2f = (w2 * scale2[None, :]).astype(jnp.float32)          # (C, C)
    b1 = bias1.reshape(1, C).astype(jnp.float32)
    b2 = bias2.reshape(1, C).astype(jnp.float32)

    # Stack all groups along rows so the 1x1 convs become single big matmuls.
    x_rows = x.reshape(bn * s, d).astype(jnp.float32)         # (bn*s, d)

    groups_per_step = _pick_groups_per_step(bn, s, d, C)
    num_steps = bn // groups_per_step

    kernel = functools.partial(sg_layer_kernel, groups=groups_per_step, s=s)

    out_flat = pl.pallas_call(
        kernel,
        out_shape=jax.ShapeDtypeStruct((bn, C), jnp.float32),
        grid_spec=pltpu.PrefetchScalarGridSpec(
            num_scalar_prefetch=0,
            grid=(num_steps,),
            in_specs=[
                pl.BlockSpec((groups_per_step * s, d), lambda i: (i, 0)),  # x rows
                pl.BlockSpec((d, C), lambda i: (0, 0)),                    # W1*scale1
                pl.BlockSpec((1, C), lambda i: (0, 0)),                    # bias1
                pl.BlockSpec((C, C), lambda i: (0, 0)),                    # W2*scale2
                pl.BlockSpec((1, C), lambda i: (0, 0)),                    # bias2
            ],
            out_specs=pl.BlockSpec((groups_per_step, C), lambda i: (i, 0)),
        ),
        compiler_params=pltpu.CompilerParams(
            dimension_semantics=("parallel",)
        ),
    )(x_rows, w1f, b1, w2f, b2)

    # (b*n, C) -> (b, n, C) -> (b, C, n)
    return out_flat.reshape(b, n, C).transpose(0, 2, 1)


def sg_layer_reference(x, w1, w2, scale1, bias1, scale2, bias2):
    """Pure-JAX reference of the same math (unfolded), for correctness check."""
    b, n, s, d = x.shape
    C = w1.shape[1]
    xf = x.reshape(b * n, s, d).astype(jnp.float32)
    y1 = jnp.maximum(jnp.einsum("gsd,dc->gsc", xf, w1) * scale1 + bias1, 0.0)
    y2 = jnp.maximum(jnp.einsum("gsc,ce->gse", y1, w2) * scale2 + bias2, 0.0)
    pooled = jnp.max(y2, axis=1)                              # (b*n, C)
    return pooled.reshape(b, n, C).transpose(0, 2, 1)


if __name__ == "__main__":
    # Small shapes consistent with the module: x is (b, n, s, d), in_channels=d.
    b, n, s, d = 2, 8, 16, 4          # in_channels = 4
    C = 32                            # out_channels

    key = jax.random.PRNGKey(0)
    kx, kw1, kw2, kg1, kb1, kg2, kb2, km1, kv1, km2, kv2 = jax.random.split(key, 11)

    x = jax.random.normal(kx, (b, n, s, d), dtype=jnp.float32)

    # Conv1d weights (kernel_size=1, bias=False): PyTorch shape (C_out, C_in, 1)
    # stored here transposed as (C_in, C_out) so the 1x1 conv is a plain matmul.
    w1 = 0.1 * jax.random.normal(kw1, (d, C), dtype=jnp.float32)
    w2 = 0.1 * jax.random.normal(kw2, (C, C), dtype=jnp.float32)

    # BatchNorm1d params (inference mode, folded into scale/bias).
    eps = 1e-5
    gamma1 = 1.0 + 0.1 * jax.random.normal(kg1, (C,), dtype=jnp.float32)
    beta1 = 0.1 * jax.random.normal(kb1, (C,), dtype=jnp.float32)
    mean1 = 0.1 * jax.random.normal(km1, (C,), dtype=jnp.float32)
    var1 = jnp.abs(jax.random.normal(kv1, (C,), dtype=jnp.float32)) + 0.5
    gamma2 = 1.0 + 0.1 * jax.random.normal(kg2, (C,), dtype=jnp.float32)
    beta2 = 0.1 * jax.random.normal(kb2, (C,), dtype=jnp.float32)
    mean2 = 0.1 * jax.random.normal(km2, (C,), dtype=jnp.float32)
    var2 = jnp.abs(jax.random.normal(kv2, (C,), dtype=jnp.float32)) + 0.5
    # TODO(synk): PyTorch BatchNorm1d in training mode uses batch statistics;
    # here inference-mode (running stats) BN is folded into scale/bias.

    scale1 = gamma1 / jnp.sqrt(var1 + eps)
    bias1 = beta1 - mean1 * scale1
    scale2 = gamma2 / jnp.sqrt(var2 + eps)
    bias2 = beta2 - mean2 * scale2

    out = sg_layer_forward(x, w1, w2, scale1, bias1, scale2, bias2)
    out = jax.block_until_ready(out)

    ref = sg_layer_reference(x, w1, w2, scale1, bias1, scale2, bias2)
    assert out.shape == (b, C, n), out.shape
    assert jnp.allclose(out, ref, atol=1e-4, rtol=1e-4), "mismatch vs reference"

    print("KERNEL_OK")
</pallas_src>

<mosaic_0001>
module attributes {stable_mosaic.version = 11 : i64} {
  func.func @sg_layer_kernel(%arg0: i32, %arg1: memref<128x4xf32, #tpu.memory_space<vmem>>, %arg2: memref<4x32xf32, #tpu.memory_space<vmem>>, %arg3: memref<1x32xf32, #tpu.memory_space<vmem>>, %arg4: memref<32x32xf32, #tpu.memory_space<vmem>>, %arg5: memref<1x32xf32, #tpu.memory_space<vmem>>, %arg6: memref<8x32xf32, #tpu.memory_space<vmem>>) attributes {dimension_semantics = [#tpu.dimension_semantics<parallel>], iteration_bounds = array<i64: 2>, scalar_prefetch = 0 : i64, scratch_operands = 0 : i64, tpu.core_type = #tpu.core_type<tc>, window_params = [{transform_indices = @transform_0, window_bounds = array<i64: 128, 4>}, {pipeline_mode = #tpu.pipeline_mode<synchronous>, transform_indices = @transform_1, window_bounds = array<i64: 4, 32>}, {pipeline_mode = #tpu.pipeline_mode<synchronous>, transform_indices = @transform_2, window_bounds = array<i64: 1, 32>}, {pipeline_mode = #tpu.pipeline_mode<synchronous>, transform_indices = @transform_3, window_bounds = array<i64: 32, 32>}, {pipeline_mode = #tpu.pipeline_mode<synchronous>, transform_indices = @transform_4, window_bounds = array<i64: 1, 32>}, {transform_indices = @transform_5, window_bounds = array<i64: 8, 32>}]} {
    %c0 = arith.constant 0 : index
    %c0_0 = arith.constant 0 : index
    %0 = vector.load %arg1[%c0, %c0_0] : memref<128x4xf32, #tpu.memory_space<vmem>>, vector<128x4xf32>
    %c0_1 = arith.constant 0 : index
    %c0_2 = arith.constant 0 : index
    %1 = vector.load %arg2[%c0_1, %c0_2] : memref<4x32xf32, #tpu.memory_space<vmem>>, vector<4x32xf32>
    %cst = arith.constant dense<0.000000e+00> : vector<128x32xf32>
    %2 = tpu.matmul %0, %1, %cst {dimension_numbers = #tpu.dot_dimension_numbers<[1], [0], [0], [1], [0, 0, 1, 1], [], []>} : vector<128x4xf32>, vector<4x32xf32>, vector<128x32xf32> -> vector<128x32xf32>
    %c0_3 = arith.constant 0 : index
    %c0_4 = arith.constant 0 : index
    %3 = vector.load %arg3[%c0_3, %c0_4] : memref<1x32xf32, #tpu.memory_space<vmem>>, vector<1x32xf32>
    %4 = vector.broadcast %3 : vector<1x32xf32> to vector<128x32xf32>
    %5 = arith.addf %2, %4 : vector<128x32xf32>
    %cst_5 = arith.constant 0.000000e+00 : f32
    %6 = vector.broadcast %cst_5 : f32 to vector<128x32xf32>
    %7 = arith.maximumf %5, %6 : vector<128x32xf32>
    %c0_6 = arith.constant 0 : index
    %c0_7 = arith.constant 0 : index
    %8 = vector.load %arg4[%c0_6, %c0_7] : memref<32x32xf32, #tpu.memory_space<vmem>>, vector<32x32xf32>
    %cst_8 = arith.constant dense<0.000000e+00> : vector<128x32xf32>
    %9 = tpu.matmul %7, %8, %cst_8 {dimension_numbers = #tpu.dot_dimension_numbers<[1], [0], [0], [1], [0, 0, 1, 1], [], []>} : vector<128x32xf32>, vector<32x32xf32>, vector<128x32xf32> -> vector<128x32xf32>
    %c0_9 = arith.constant 0 : index
    %c0_10 = arith.constant 0 : index
    %10 = vector.load %arg5[%c0_9, %c0_10] : memref<1x32xf32, #tpu.memory_space<vmem>>, vector<1x32xf32>
    %11 = vector.broadcast %10 : vector<1x32xf32> to vector<128x32xf32>
    %12 = arith.addf %9, %11 : vector<128x32xf32>
    %cst_11 = arith.constant 0.000000e+00 : f32
    %13 = vector.broadcast %cst_11 : f32 to vector<128x32xf32>
    %14 = arith.maximumf %12, %13 : vector<128x32xf32>
    %15 = vector.shape_cast %14 : vector<128x32xf32> to vector<8x16x32xf32>
    %cst_12 = arith.constant dense<0xFF800000> : vector<8x32xf32>
    %16 = vector.multi_reduction <maximumf>, %15, %cst_12 [1] : vector<8x16x32xf32> to vector<8x32xf32>
    %c0_13 = arith.constant 0 : index
    %c0_14 = arith.constant 0 : index
    %17 = vector.load %arg6[%c0_13, %c0_14] : memref<8x32xf32, #tpu.memory_space<vmem>>, vector<8x32xf32>
    tpu.vector_store %arg6[%c0_13, %c0_14], %16 {strides = array<i32>} : memref<8x32xf32, #tpu.memory_space<vmem>>, vector<8x32xf32>,
    return
  }
  func.func @transform_0(%arg0: i32) -> (i32, i32) {
    %c0_i32 = arith.constant 0 : i32
    %c0_i32_0 = arith.constant 0 : i32
    return %arg0, %c0_i32 : i32, i32
  }
  func.func @transform_1(%arg0: i32) -> (i32, i32) {
    %c0_i32 = arith.constant 0 : i32
    %c0_i32_0 = arith.constant 0 : i32
    %c0_i32_1 = arith.constant 0 : i32
    return %c0_i32, %c0_i32_0 : i32, i32
  }
  func.func @transform_2(%arg0: i32) -> (i32, i32) {
    %c0_i32 = arith.constant 0 : i32
    %c0_i32_0 = arith.constant 0 : i32
    %c0_i32_1 = arith.constant 0 : i32
    return %c0_i32, %c0_i32_0 : i32, i32
  }
  func.func @transform_3(%arg0: i32) -> (i32, i32) {
    %c0_i32 = arith.constant 0 : i32
    %c0_i32_0 = arith.constant 0 : i32
    %c0_i32_1 = arith.constant 0 : i32
    return %c0_i32, %c0_i32_0 : i32, i32
  }
  func.func @transform_4(%arg0: i32) -> (i32, i32) {
    %c0_i32 = arith.constant 0 : i32
    %c0_i32_0 = arith.constant 0 : i32
    %c0_i32_1 = arith.constant 0 : i32
    return %c0_i32, %c0_i32_0 : i32, i32
  }
  func.func @transform_5(%arg0: i32) -> (i32, i32) {
    %c0_i32 = arith.constant 0 : i32
    %c0_i32_0 = arith.constant 0 : i32
    return %arg0, %c0_i32 : i32, i32
  }
}

</mosaic_0001>

<bundles_post_ra>
// kernel: tpu_custom_call.1
= control target key start
LH: loop header
LB: loop body
LE: loop exit
PB: predicated region body
PF: predicated region fallthrough
CT: control target
= control target key end

     0   :  { %10 = vsyncpa [#allocation3], 0  ;;  %s1344_s0 = inlined_call_operand.vmem [shape: f32[256,4], index: 0, kind: input, shape index: {}]   ;;  %s1345_s1 = inlined_call_operand.vmem [shape: f32[4,32], index: 1, kind: input, shape index: {}]   ;;  %s1346_s2 = inlined_call_operand.vmem [shape: f32[1,32], index: 2, kind: input, shape index: {}]   ;;  %s1347_s3 = inlined_call_operand.vmem [shape: f32[32,32], index: 3, kind: input, shape index: {}]   ;;  %s1348_s4 = inlined_call_operand.vmem [shape: f32[1,32], index: 4, kind: input, shape index: {}]   ;;  %s1349_s5 = inlined_call_operand.hbm [shape: f32[16,32], index: 5, kind: output, shape index: {}]  }
   0x1   :  { %12 = vsyncpa [#allocation3 + $0x1], 0  ;;  %s1136_s18 = smov 0   ;;  %s1138_s19 = smov 0  }
   0x2   :  { %s1140_s20 = smov 0   ;;  %s1142_s21 = smov 0  }
   0x3 LB: > { %s1157_s22 = sadd.s32 4294967295, %s1103_s21   ;;  %s853_s23 = sadd.s32 4294967294, %s1103_s21   ;;  %s1103_s21 = sphi %s1142_s21, %s1355_s21   ;;  %s1099_s20 = sphi %s1140_s20, %s1354_s20   ;;  %s1095_s19 = sphi %s1138_s19, %s1353_s19   ;;  %s1091_s18 = sphi %s1136_s18, %s1352_s18  }
   0x4   : > { %s1161_s24 = sadd.s32 1, %s1103_s21   ;;  %s135_s25 = sadd.s32 1, %s1099_s20 }
   0x5   : > { %s132_s26 = ssub.s32 %s1103_s21, %s1161_s24  ;;  %p145_p0 = scmp.ne.s32.totalorder %s1099_s20, %s1095_s19 }
   0x6   : > { %p133_p1 = scmp.eq.s32.totalorder %s132_s26, 0  ;;  %p146_p2 = scmp.eq.s32.totalorder %s1157_s22, 1 }
   0x7   : > { %p151_p3 = scmp.ne.s32.totalorder %s1095_s19, %s1091_s18  ;;  %p152_p4 = scmp.eq.s32.totalorder %s853_s23, 1 }
   0x8   : > { %s1172_s27 = scalar_select %p133_p1, %s1099_s20, %s135_s25  }
   0x9   : > { %p1174_p5 = por %p146_p2, %p145_p0  ;;  %p1178_p6 = por %p152_p4, %p151_p3 }
   0xa   : > { %p856_p7 = scmp.ge.s32.totalorder %s1103_s21, 1  ;;  %p191_p8 = scmp.lt.s32.totalorder %s1103_s21, 3 }
   0xc   : > { %p192_p9 = pnand %p856_p7, %p191_p8 }
   0xd   : > { %v241_v0 = vld [vmem:[%s1345_s1] sm:$0xf] (!%p192_p9)  ;;  %vm298_vm0 = vcmask (!%p192_p9), 1043456   ;;  %s858_s7 = sshll.u32 (!%p192_p9), %s1157_s22, 4  ;;  %v464_v2 = vld [vmem:[%s1347_s3 + $0x8] sm:$0xff] (!%p192_p9)  ;;  %vm249_vm1 = vcmask (!%p192_p9), 31744  }
   0xe   : > { %195 = sbr.rel (%p192_p9) target bundleno = 519 (0x207), region = 40  ;;  %v463_v1 = vld [vmem:[%s1347_s3] sm:$0xff] (!%p192_p9)  ;;  %936 = vmatprep.subr.msk.mxu0 (!%p192_p9), %vm298_vm0, %v241_v0  ;;  %p220_p10 = scmp.lt.s32.totalorder (!%p192_p9), %s858_s7, 31  ;;  %v465_v20 = vld [vmem:[%s1347_s3 + $0x10] sm:$0xff] (!%p192_p9)  ;;  %v466_v21 = vld [vmem:[%s1347_s3 + $0x18] sm:$0xff] (!%p192_p9)  ;;  %vm474_vm2 = vcmask (!%p192_p9), 261120  }
   0xf   : > { %937 = vmatpush3.msk.msra.mxu0 (!%p192_p9), %vm298_vm0, %v241_v0  ;;  %v994_v3 = vpack.c.bf16 (!%p192_p9), %v464_v2, %v463_v1  ;;  %v998_v22 = vpack.c.bf16 (!%p192_p9), %v466_v21, %v465_v20  ;;  %v860_v23 = vld [vmem:[%s1346_s2] ss:$0 sm:$0xff] (!%p192_p9)  ;;  %vm764_vm3 = vcmask (!%p192_p9), 1041409   ;;  %vm766_vm4 = vcmask (!%p192_p9), 1042434   ;;  %s216_s8 = sand.u32 (!%p192_p9), 1, %s1095_s19   ;;  %s896_s10 = sshll.u32 (!%p192_p9), %s1157_s22, 7 }
  0x10   : > { %vm768_vm5 = vcmask (!%p192_p9), 1043459   ;;  %vm770_vm6 = vcmask (!%p192_p9), 1044484   ;;  %vm772_vm7 = vcmask (!%p192_p9), 1045509   ;;  %s857_s9 = sshll.u32 (!%p192_p9), %s216_s8, 3  ;;  %vm774_vm8 = vcmask (!%p192_p9), 1046534   ;;  %s781_s16 = scalar_lea.sflag (!%p192_p9), [#allocation3], %s216_s8 }
  0x11   : > { %995 = vmatprep.subr.bf16.mxu1 (!%p192_p9), %v994_v3  ;;  %s218_s11 = scalar_lea.vmem (!%p192_p9), [#allocation2], %s857_s9  ;;  %vm776_vm9 = vcmask (!%p192_p9), 1047559   ;;  %s1105_s22 = smov (!%p192_p9), [#allocation2]  }
  0x12   : > { %997 = vmatpush3.bf16.msra.mxu1 (!%p192_p9), %v994_v3  ;;  %s1045_s23 = sshll.u32 (!%p192_p9), %s1105_s22, 4  ;;  %s1046_s23 = int_to_ptr.vmem [resolvable:$false] %s1045_s23 }
  0x13   : > { %999 = vmatprep.subr.bf16.mxu1 (!%p192_p9), %v998_v22  ;;  %s1047_s25 = scalar_lea.vmem (!%p192_p9), %s1046_s23, 256 }
  0x15   : > { %s1357_s7 = smov (!%p220_p10, %s858_s7), 31 }
  0x16   : > { %s859_s12 = sshll.u32 %s1357_s7, 3  ;;  %1001 = vmatpush3.bf16.msra.mxu1 %v998_v22 }
  0x17   : > { %s1197_s15 = scalar_lea.vmem %s1344_s0, %s859_s12  ;;  %s794_s12 = sshll.u32 %s218_s11, 4  ;;  %s1303_s12 = int_to_ptr.vmem [resolvable:$true] %s794_s12 }
  0x18   : > { %v225_v4 = vld [vmem:[%s1197_s15] sm:$0xff]  ;;  %v226_v5 = vld [vmem:[%s1197_s15 + $0x8] sm:$0xff]  ;;  %v227_v6 = vld [vmem:[%s1197_s15 + $0x10] sm:$0xff]  ;;  %s1041_s17 = scalar_lea.vmem %s1303_s12, 128  ;;  %p1048_p0 = scmp.lt.s32.totalorder %s1303_s12, %s1046_s23 }
  0x19   : > { %938 = vmatprep.mubr.msk.f32.mxu0 %vm249_vm1, %v225_v4  ;;  %v228_v7 = vld [vmem:[%s1197_s15 + $0x18] sm:$0xff]  ;;  %v229_v8 = vld [vmem:[%s1197_s15 + $0x20] sm:$0xff]  ;;  %v230_v9 = vld [vmem:[%s1197_s15 + $0x28] sm:$0xff]  ;;  %p1042_p11 = scmp.ne.s32.totalorder %s1303_s12, %s1041_s17  ;;  %p1049_p1 = scmp.lt.s32.totalorder %s1047_s25, %s1041_s17 }
  0x1a   : > { %939 = vmatmul.mubr.msk.f32.vlgmr.msra.gmra.mrb[0].mxu0 %vm249_vm1, %v226_v5  ;;  %v231_v10 = vld [vmem:[%s1197_s15 + $0x30] sm:$0xff]  ;;  %v232_v11 = vld [vmem:[%s1197_s15 + $0x38] sm:$0xff]  ;;  %v233_v12 = vld [vmem:[%s1197_s15 + $0x40] sm:$0xff] }
  0x1b   : > { %941 = vmatprep.mubr.msk.f32.mxu0 %vm249_vm1, %v227_v6  ;;  %v234_v13 = vld [vmem:[%s1197_s15 + $0x48] sm:$0xff]  ;;  %v235_v14 = vld [vmem:[%s1197_s15 + $0x50] sm:$0xff]  ;;  %v236_v15 = vld [vmem:[%s1197_s15 + $0x58] sm:$0xff]  ;;  %p1043_p12 = pnand %p1042_p11, %p1174_p5  ;;  %p1050_p2 = por %p1049_p1, %p1048_p0 }
  0x1c   : > { %v237_v16 = vld [vmem:[%s1197_s15 + $0x60] sm:$0xff]  ;;  %v238_v17 = vld [vmem:[%s1197_s15 + $0x68] sm:$0xff]  ;;  %v239_v18 = vld [vmem:[%s1197_s15 + $0x70] sm:$0xff] }
  0x1d   : > { %v240_v19 = vld [vmem:[%s1197_s15 + $0x78] sm:$0xff]  ;;  %s1301_s15 = scalar_lea.hbm %s1349_s5, %s896_s10  ;;  %p1044_p13 = pneg %p1043_p12 }
  0x1e   : > { %942 = vmatmul.mubr.msk.f32.gmra.mrb[2].mxu0 %vm249_vm1, %v228_v7 }
  0x1f   : > { %944 = vmatprep.mubr.msk.f32.mxu0 %vm249_vm1, %v229_v8  ;;  %v1259_v8 = vld [vmem:[%s1348_s4] ss:$0 sm:$0xff]  ;;  %p1051_p3 = pnand %p1050_p2, %p1044_p13 }
  0x22   : > { %945 = vmatmul.mubr.msk.f32.gmra.mrb[4].mxu0 %vm249_vm1, %v230_v9 }
  0x23   : > { %947 = vmatprep.mubr.msk.f32.mxu0 %vm249_vm1, %v231_v10 }
  0x26   : > { %948 = vmatmul.mubr.msk.f32.gmra.mrb[6].mxu0 %vm249_vm1, %v232_v11 }
  0x27   : > { %950 = vmatprep.mubr.msk.f32.mxu0 %vm249_vm1, %v233_v12 }
  0x2a   : > { %951 = vmatmul.mubr.msk.f32.gmra.mrb[8].mxu0 %vm249_vm1, %v234_v13 }
  0x2b   : > { %953 = vmatprep.mubr.msk.f32.mxu0 %vm249_vm1, %v235_v14 }
  0x2e   : > { %954 = vmatmul.mubr.msk.f32.gmra.mrb[10].mxu0 %vm249_vm1, %v236_v15 }
  0x2f   : > { %956 = vmatprep.mubr.msk.f32.mxu0 %vm249_vm1, %v237_v16 }
  0x32   : > { %957 = vmatmul.mubr.msk.f32.gmra.mrb[12].mxu0 %vm249_vm1, %v238_v17 }
  0x33   : > { %959 = vmatprep.mubr.msk.f32.mxu0 %vm249_vm1, %v239_v18 }
  0x36   : > { %960 = vmatmul.mubr.msk.f32.gmra.mrb[14].mxu0 %vm249_vm1, %v240_v19 }
  0xed   : > { %v940_v24 = vpop.f32.mrb[0].mxu0 }
  0xee   : > { %v374_v25 = vadd.f32 %v940_v24, %v860_v23  ;;  %v368_v26 = vpop.f32.mrb[1].mxu0 }
  0xef   : > { %v369_v27 = vadd.f32 %v860_v23, %v368_v26 }
  0xf0   : > { %v448_v30 = vmax.f32 %v374_v25, 0.0 }
  0xf1   : > { %v447_v28 = vmax.f32 %v369_v27, 0.0  ;;  %v943_v29 = vpop.f32.mrb[2].mxu0 }
  0xf2   : > { %v384_v31 = vadd.f32 %v943_v29, %v860_v23  ;;  %v378_v32 = vpop.f32.mrb[3].mxu0 }
  0xf3   : > { %v379_v33 = vadd.f32 %v860_v23, %v378_v32  ;;  %970 = vmatprep.mubr.msk.f32.mxu1 %vm474_vm2, %v447_v28 }
  0xf4   : > { %971 = vmatmul.mubr.msk.f32.vlgmr.msra.gmra.mrb[0].mxu1 %vm474_vm2, %v448_v30  ;;  %v450_v36 = vmax.f32 %v384_v31, 0.0 }
  0xf5   : > { %v449_v34 = vmax.f32 %v379_v33, 0.0  ;;  %v946_v35 = vpop.f32.mrb[4].mxu0 }
  0xf6   : > { %v394_v37 = vadd.f32 %v946_v35, %v860_v23  ;;  %v388_v38 = vpop.f32.mrb[5].mxu0 }
  0xf7   : > { %v389_v39 = vadd.f32 %v860_v23, %v388_v38  ;;  %973 = vmatprep.mubr.msk.f32.mxu1 %vm474_vm2, %v449_v34 }
  0xf8   : > { %974 = vmatmul.mubr.msk.f32.gmra.mrb[2].mxu1 %vm474_vm2, %v450_v36  ;;  %v452_v42 = vmax.f32 %v394_v37, 0.0 }
  0xf9   : > { %v451_v40 = vmax.f32 %v389_v39, 0.0  ;;  %v949_v41 = vpop.f32.mrb[6].mxu0 }
  0xfa   : > { %v404_v43 = vadd.f32 %v949_v41, %v860_v23  ;;  %v398_v44 = vpop.f32.mrb[7].mxu0 }
  0xfb   : > { %v399_v45 = vadd.f32 %v860_v23, %v398_v44  ;;  %976 = vmatprep.mubr.msk.f32.mxu1 %vm474_vm2, %v451_v40 }
  0xfc   : > { %977 = vmatmul.mubr.msk.f32.gmra.mrb[4].mxu1 %vm474_vm2, %v452_v42  ;;  %v454_v48 = vmax.f32 %v404_v43, 0.0 }
  0xfd   : > { %v453_v46 = vmax.f32 %v399_v45, 0.0  ;;  %v952_v47 = vpop.f32.mrb[8].mxu0 }
  0xfe   : > { %v414_v49 = vadd.f32 %v952_v47, %v860_v23  ;;  %v408_v50 = vpop.f32.mrb[9].mxu0 }
  0xff   : > { %v409_v51 = vadd.f32 %v860_v23, %v408_v50  ;;  %979 = vmatprep.mubr.msk.f32.mxu1 %vm474_vm2, %v453_v46 }
 0x100   : > { %980 = vmatmul.mubr.msk.f32.gmra.mrb[6].mxu1 %vm474_vm2, %v454_v48  ;;  %v456_v54 = vmax.f32 %v414_v49, 0.0 }
 0x101   : > { %v455_v52 = vmax.f32 %v409_v51, 0.0  ;;  %v955_v53 = vpop.f32.mrb[10].mxu0 }
 0x102   : > { %v424_v55 = vadd.f32 %v955_v53, %v860_v23  ;;  %v418_v56 = vpop.f32.mrb[11].mxu0 }
 0x103   : > { %v419_v57 = vadd.f32 %v860_v23, %v418_v56  ;;  %982 = vmatprep.mubr.msk.f32.mxu1 %vm474_vm2, %v455_v52 }
 0x104   : > { %983 = vmatmul.mubr.msk.f32.gmra.mrb[8].mxu1 %vm474_vm2, %v456_v54  ;;  %v458_v60 = vmax.f32 %v424_v55, 0.0 }
 0x105   : > { %v457_v58 = vmax.f32 %v419_v57, 0.0  ;;  %v958_v59 = vpop.f32.mrb[12].mxu0 }
 0x106   : > { %v434_v61 = vadd.f32 %v958_v59, %v860_v23  ;;  %v428_v62 = vpop.f32.mrb[13].mxu0 }
 0x107   : > { %v429_v63 = vadd.f32 %v860_v23, %v428_v62  ;;  %985 = vmatprep.mubr.msk.f32.mxu1 %vm474_vm2, %v457_v58 }
 0x108   : > { %986 = vmatmul.mubr.msk.f32.gmra.mrb[10].mxu1 %vm474_vm2, %v458_v60  ;;  %v460_v2 = vmax.f32 %v434_v61, 0.0 }
 0x109   : > { %v459_v0 = vmax.f32 %v429_v63, 0.0  ;;  %v961_v1 = vpop.f32.mrb[14].mxu0 }
 0x10a   : > { %v444_v3 = vadd.f32 %v961_v1, %v860_v23  ;;  %v438_v4 = vpop.f32.mrb[15].mxu0 }
 0x10b   : > { %v439_v5 = vadd.f32 %v860_v23, %v438_v4  ;;  %988 = vmatprep.mubr.msk.f32.mxu1 %vm474_vm2, %v459_v0 }
 0x10c   : > { %989 = vmatmul.mubr.msk.f32.gmra.mrb[12].mxu1 %vm474_vm2, %v460_v2  ;;  %v462_v7 = vmax.f32 %v444_v3, 0.0 }
 0x10d   : > { %v461_v6 = vmax.f32 %v439_v5, 0.0 }
 0x10f   : > { %991 = vmatprep.mubr.msk.f32.mxu1 %vm474_vm2, %v461_v6 }
 0x110   : > { %992 = vmatmul.mubr.msk.f32.gmra.mrb[14].mxu1 %vm474_vm2, %v462_v7 }
 0x1c7   : > { %v972_v9 = vpop.f32.mrb[0].mxu1 }
 0x1c8   : > { %v595_v10 = vadd.f32 %v972_v9, %v1259_v8  ;;  %v589_v11 = vpop.f32.mrb[1].mxu1 }
 0x1c9   : > { %v590_v12 = vadd.f32 %v1259_v8, %v589_v11 }
 0x1ca   : > { %v669_v13 = vmax.f32 %v595_v10, 0.0 }
 0x1cb   : > { %v668_v14 = vmax.f32 %v590_v12, 0.0  ;;  %v975_v15 = vpop.f32.mrb[2].mxu1 }
 0x1cc   : > { %v685_v16 = vsel %vm474_vm2, %v669_v13, -inf  ;;  %v605_v17 = vadd.f32 %v975_v15, %v1259_v8  ;;  %v599_v18 = vpop.f32.mrb[3].mxu1 }
 0x1cd   : > { %v684_v19 = vsel %vm474_vm2, %v668_v14, -inf  ;;  %v600_v20 = vadd.f32 %v1259_v8, %v599_v18 }
 0x1ce   : > { %v686_v21 = vmax.f32 %v684_v19, %v685_v16  ;;  %v671_v22 = vmax.f32 %v605_v17, 0.0 }
 0x1cf   : > { %v670_v23 = vmax.f32 %v600_v20, 0.0  ;;  %v978_v24 = vpop.f32.mrb[4].mxu1 }
 0x1d0   : > { %v687_v25 = vrot.slane %v686_v21, 4  ;;  %v694_v26 = vsel %vm474_vm2, %v671_v22, -inf  ;;  %v615_v27 = vadd.f32 %v978_v24, %v1259_v8  ;;  %v609_v28 = vpop.f32.mrb[5].mxu1 }
 0x1d1   : > { %v693_v29 = vsel %vm474_vm2, %v670_v23, -inf  ;;  %v610_v30 = vadd.f32 %v1259_v8, %v609_v28 }
 0x1d2   : > { %v688_v31 = vmax.f32 %v686_v21, %v687_v25  ;;  %v695_v32 = vmax.f32 %v693_v29, %v694_v26  ;;  %v673_v33 = vmax.f32 %v615_v27, 0.0 }
 0x1d3   : > { %v672_v34 = vmax.f32 %v610_v30, 0.0  ;;  %v981_v35 = vpop.f32.mrb[6].mxu1 }
 0x1d4   : > { %v689_v36 = vrot.slane %v688_v31, 2  ;;  %v696_v37 = vrot.slane %v695_v32, 4  ;;  %v703_v38 = vsel %vm474_vm2, %v673_v33, -inf  ;;  %v625_v39 = vadd.f32 %v981_v35, %v1259_v8  ;;  %v619_v40 = vpop.f32.mrb[7].mxu1 }
 0x1d5   : > { %v702_v41 = vsel %vm474_vm2, %v672_v34, -inf  ;;  %v620_v42 = vadd.f32 %v1259_v8, %v619_v40 }
 0x1d6   : > { %v690_v43 = vmax.f32 %v688_v31, %v689_v36  ;;  %v697_v44 = vmax.f32 %v695_v32, %v696_v37  ;;  %v704_v45 = vmax.f32 %v702_v41, %v703_v38  ;;  %v675_v46 = vmax.f32 %v625_v39, 0.0 }
 0x1d7   : > { %v674_v47 = vmax.f32 %v620_v42, 0.0  ;;  %v984_v48 = vpop.f32.mrb[8].mxu1 }
 0x1d8   : > { %v698_v49 = vrot.slane %v697_v44, 2  ;;  %v705_v50 = vrot.slane %v704_v45, 4  ;;  %v712_v51 = vsel %vm474_vm2, %v675_v46, -inf  ;;  %v629_v52 = vpop.f32.mrb[9].mxu1  ;;  %v691_v53 = vrot.slane %v690_v43, 1 }
 0x1d9   : > { %v711_v54 = vsel %vm474_vm2, %v674_v47, -inf  ;;  %v635_v55 = vadd.f32 %v984_v48, %v1259_v8  ;;  %v630_v56 = vadd.f32 %v1259_v8, %v629_v52 }
 0x1da   : > { %v699_v57 = vmax.f32 %v697_v44, %v698_v49  ;;  %v706_v58 = vmax.f32 %v704_v45, %v705_v50  ;;  %v713_v59 = vmax.f32 %v711_v54, %v712_v51  ;;  %v692_v4 = vmax.f32 %v690_v43, %v691_v53 }
 0x1db   : > { %v677_v60 = vmax.f32 %v635_v55, 0.0  ;;  %v676_v61 = vmax.f32 %v630_v56, 0.0  ;;  %v987_v62 = vpop.f32.mrb[10].mxu1 }
 0x1dc   : > { %v700_v63 = vrot.slane %v699_v57, 1  ;;  %v707_v0 = vrot.slane %v706_v58, 2  ;;  %v714_v1 = vrot.slane %v713_v59, 4  ;;  %v645_v2 = vadd.f32 %v987_v62, %v1259_v8  ;;  %v639_v3 = vpop.f32.mrb[11].mxu1 }
 0x1dd   : > { %v721_v5 = vsel %vm474_vm2, %v677_v60, -inf  ;;  %v720_v6 = vsel %vm474_vm2, %v676_v61, -inf  ;;  %v640_v7 = vadd.f32 %v1259_v8, %v639_v3 }
 0x1de   : > { %v701_v9 = vmax.f32 %v699_v57, %v700_v63  ;;  %v708_v10 = vmax.f32 %v706_v58, %v707_v0  ;;  %v715_v11 = vmax.f32 %v713_v59, %v714_v1  ;;  %v722_v12 = vmax.f32 %v720_v6, %v721_v5 }
 0x1df   : > { %v679_v13 = vmax.f32 %v645_v2, 0.0  ;;  %v678_v14 = vmax.f32 %v640_v7, 0.0  ;;  %v990_v15 = vpop.f32.mrb[12].mxu1 }
 0x1e0   : > { %v765_v16 = vsel %vm764_vm3, %v701_v9, %v692_v4  ;;  %v709_v17 = vrot.slane %v708_v10, 1  ;;  %v716_v18 = vrot.slane %v715_v11, 2  ;;  %v723_v19 = vrot.slane %v722_v12, 4  ;;  %v649_v20 = vpop.f32.mrb[13].mxu1 }
 0x1e1   : > { %v730_v21 = vsel %vm474_vm2, %v679_v13, -inf  ;;  %v729_v22 = vsel %vm474_vm2, %v678_v14, -inf  ;;  %v655_v23 = vadd.f32 %v990_v15, %v1259_v8  ;;  %v650_v24 = vadd.f32 %v1259_v8, %v649_v20 }
 0x1e2   : > { %v710_v25 = vmax.f32 %v708_v10, %v709_v17  ;;  %v717_v26 = vmax.f32 %v715_v11, %v716_v18  ;;  %v724_v27 = vmax.f32 %v722_v12, %v723_v19  ;;  %v731_v28 = vmax.f32 %v729_v22, %v730_v21 }
 0x1e3   : > { %v681_v29 = vmax.f32 %v655_v23, 0.0  ;;  %v680_v30 = vmax.f32 %v650_v24, 0.0  ;;  %v993_v31 = vpop.f32.mrb[14].mxu1 }
 0x1e4   : > { %v767_v32 = vsel %vm766_vm4, %v710_v25, %v765_v16  ;;  %v718_v33 = vrot.slane %v717_v26, 1  ;;  %v725_v34 = vrot.slane %v724_v27, 2  ;;  %v732_v35 = vrot.slane %v731_v28, 4  ;;  %v659_v36 = vpop.f32.mrb[15].mxu1 }
 0x1e5   : > { %v739_v37 = vsel %vm474_vm2, %v681_v29, -inf  ;;  %v738_v38 = vsel %vm474_vm2, %v680_v30, -inf  ;;  %v665_v39 = vadd.f32 %v993_v31, %v1259_v8  ;;  %v660_v40 = vadd.f32 %v1259_v8, %v659_v36 }
 0x1e6   : > { %v719_v41 = vmax.f32 %v717_v26, %v718_v33  ;;  %v726_v42 = vmax.f32 %v724_v27, %v725_v34  ;;  %v733_v43 = vmax.f32 %v731_v28, %v732_v35  ;;  %v740_v44 = vmax.f32 %v738_v38, %v739_v37 }
 0x1e7   : > { %v683_v45 = vmax.f32 %v665_v39, 0.0  ;;  %v682_v46 = vmax.f32 %v660_v40, 0.0 }
 0x1e8   : > { %v769_v47 = vsel %vm768_vm5, %v719_v41, %v767_v32  ;;  %v727_v48 = vrot.slane %v726_v42, 1  ;;  %v734_v49 = vrot.slane %v733_v43, 2  ;;  %v741_v50 = vrot.slane %v740_v44, 4 }
 0x1e9   : > { %v748_v51 = vsel %vm474_vm2, %v683_v45, -inf  ;;  %v747_v52 = vsel %vm474_vm2, %v682_v46, -inf }
 0x1ea   : > { %v728_v53 = vmax.f32 %v726_v42, %v727_v48  ;;  %v735_v54 = vmax.f32 %v733_v43, %v734_v49  ;;  %v742_v8 = vmax.f32 %v740_v44, %v741_v50  ;;  %v749_v55 = vmax.f32 %v747_v52, %v748_v51 }
 0x1ec   : > { %v736_v56 = vrot.slane %v735_v54, 1  ;;  %v743_v57 = vrot.slane %v742_v8, 2  ;;  %v750_v58 = vrot.slane %v749_v55, 4  ;;  %v771_v59 = vsel %vm770_vm6, %v728_v53, %v769_v47 }
 0x1ee   : > { %v737_v60 = vmax.f32 %v735_v54, %v736_v56  ;;  %v744_v61 = vmax.f32 %v742_v8, %v743_v57  ;;  %v751_v62 = vmax.f32 %v749_v55, %v750_v58 }
 0x1f0   : > { %v745_v63 = vrot.slane %v744_v61, 1  ;;  %v752_v0 = vrot.slane %v751_v62, 2  ;;  %v773_v1 = vsel %vm772_vm7, %v737_v60, %v771_v59 }
 0x1f2   : > { %v746_v2 = vmax.f32 %v744_v61, %v745_v63  ;;  %v753_v3 = vmax.f32 %v751_v62, %v752_v0 }
 0x1f4   : > { %v754_v4 = vrot.slane %v753_v3, 1  ;;  %v775_v5 = vsel %vm774_vm8, %v746_v2, %v773_v1 }
 0x1f6   : > { %v755_v6 = vmax.f32 %v753_v3, %v754_v4 }
 0x1f8   : > { %v777_v7 = vsel %vm776_vm9, %v755_v6, %v775_v5 }
 0x1f9   : > { %779 = vst.msk [vmem:[%s218_s11] sm:$0xff] %vm474_vm2, %v777_v7 }
 0x1fa   : > { %1054 = shalt.err (!%p1051_p3)
}
 0x1fb   : > { %s1055_s26 = scalar_lea.hbm %s1301_s15, 128  ;;  %s1059_s7 = scalar_lea.hbm %s1349_s5, 256 }
 0x1fc   : > { %p1056_p4 = scmp.ne.s32.totalorder %s1301_s15, %s1055_s26  ;;  %p1060_p9 = scmp.lt.u32.totalorder %s1301_s15, %s1349_s5 }
 0x1fd   : > { %p1061_p10 = scmp.lt.u32.totalorder %s1059_s7, %s1055_s26  ;;  %p1063_p12 = scmp.lt.u32.totalorder %s1055_s26, %s1301_s15 }
 0x1fe   : > { %p1057_p7 = pnand %p1056_p4, %p1174_p5 }
 0x1ff   : > { %p1062_p11 = por %p1061_p10, %p1060_p9 }
 0x200   : > { %p1058_p8 = pneg %p1057_p7 }
 0x201   : > { %p1064_p13 = por %p1063_p12, %p1062_p11 }
 0x203   : > { %p1065_p0 = pnand %p1064_p13, %p1058_p8 }
 0x205   : > { %1068 = shalt.err (!%p1065_p0)
}
 0x206   : > { %1002 = dma.vmem_to_hbm [thread:$0]  (%p1174_p5), %s1303_s12, 128, %s1301_s15, %s781_s16  }
 0x207 PF: > { %p1008_p1 = scmp.ge.s32.totalorder %s1103_s21, 2  ;;  %s806_s10 = sand.u32 1, %s1091_s18  }
 0x208   : > { %s807_s11 = scalar_lea.sflag [#allocation3], %s806_s10 }
 0x209   : > { %p1005_p2 = pnand %p1008_p1, %p1178_p6 }
 0x20b   : > { %1086 = dma.done.wait (!%p1005_p2), %s807_s11, 128  }
 0x20c   : > { %1088 = vsyncadd (!%p1005_p2), %s807_s11, 4294967168  ;;  %p15_p3 = scmp.ge.s32.totalorder %s1161_s24, 4   ;;  %s1352_s18 = smov %s1095_s19 }
 0x20d   : > { %s1353_s19 = smov %s1099_s20  ;;  %s1354_s20 = smov %s1172_s27 }
 0x20e   : > { %s1355_s21 = smov %s1161_s24  ;;  %17 = sbr.rel (!%p15_p3) target bundleno = 3 (0x3), region = 75 }
 0x215   :  { %812 = vsyncpa [#allocation3], 1 }
 0x216   :  { %814 = vsyncpa [#allocation3 + $0x1], 1 }

</bundles_post_ra>
